<compile_context>
chip_gen: v6e
topology: v6e:2x2x1
jax: 0.10.0
libtpu: 0.0.40
codegen_flags: <defaults>
</compile_context>

<pallas_src>
import functools

import jax
import jax.numpy as jnp
from jax.experimental import pallas as pl
from jax.experimental.pallas import tpu as pltpu


def _round_up(n, m):
    return ((n + m - 1) // m) * m


def _layernorm_kernel(x_ref, alpha_ref, beta_ref, o_ref, *, eps, feat):
    # x_ref: (tm, feat), alpha_ref/beta_ref: (1, 1), o_ref: (tm, feat)
    x = x_ref[...].astype(jnp.float32)
    mean = jnp.mean(x, axis=-1, keepdims=True)
    centered = x - mean
    # torch.std defaults to the unbiased (Bessel-corrected) estimator.
    var = jnp.sum(centered * centered, axis=-1, keepdims=True) * (1.0 / (feat - 1))
    std = jnp.sqrt(var)
    y = alpha_ref[...] * centered / (std + eps) + beta_ref[...]
    o_ref[...] = y.astype(o_ref.dtype)


def decoder_forward(x, encoder_output, alpha, beta, *, eps=1e-6, tm=256,
                    src_mask=None, target_mask=None):
    """Forward pass of `Decoder` (layer stack external / empty -> final LayerNorm).

    x: (..., d_model); alpha, beta: shape-(1,) scalar parameters.
    """
    # TODO(synk): the decoder layers (self-attn / cross-attn / FFN blocks) are
    # injected externally via nn.ModuleList and are not defined in the spec;
    # only the final custom LayerNorm is implemented as a Pallas kernel.
    del encoder_output, src_mask, target_mask

    d_model = x.shape[-1]
    lead_shape = x.shape[:-1]
    x2 = x.reshape(-1, d_model)
    M = x2.shape[0]

    # Large row tiles; clamp for tiny inputs and pad rows to a tile multiple.
    tm = max(8, min(tm, _round_up(M, 8)))
    M_pad = _round_up(M, tm)
    if M_pad != M:
        x2 = jnp.pad(x2, ((0, M_pad - M), (0, 0)))

    alpha2 = jnp.asarray(alpha, jnp.float32).reshape(1, 1)
    beta2 = jnp.asarray(beta, jnp.float32).reshape(1, 1)

    kernel = functools.partial(_layernorm_kernel, eps=float(eps), feat=d_model)

    out = pl.pallas_call(
        kernel,
        out_shape=jax.ShapeDtypeStruct((M_pad, d_model), x.dtype),
        grid_spec=pltpu.PrefetchScalarGridSpec(
            num_scalar_prefetch=0,
            grid=(M_pad // tm,),
            in_specs=[
                pl.BlockSpec((tm, d_model), lambda i: (i, 0)),
                pl.BlockSpec((1, 1), lambda i: (0, 0)),
                pl.BlockSpec((1, 1), lambda i: (0, 0)),
            ],
            out_specs=pl.BlockSpec((tm, d_model), lambda i: (i, 0)),
        ),
        compiler_params=pltpu.CompilerParams(
            dimension_semantics=("parallel",),
            vmem_limit_bytes=48 * 1024 * 1024,
        ),
        cost_estimate=pl.CostEstimate(
            flops=8 * M_pad * d_model,
            transcendentals=M_pad,
            bytes_accessed=2 * M_pad * d_model * x.dtype.itemsize,
        ),
    )(x2, alpha2, beta2)

    if M_pad != M:
        out = out[:M]
    return out.reshape(*lead_shape, d_model)


if __name__ == "__main__":
    # Small deterministic shapes consistent with the module's forward.
    batch, seq, d_model = 2, 8, 32

    key = jax.random.PRNGKey(0)
    kx, ke, ka, kb = jax.random.split(key, 4)

    x = jax.random.normal(kx, (batch, seq, d_model), dtype=jnp.float32)
    encoder_output = jax.random.normal(ke, (batch, seq, d_model), dtype=jnp.float32)
    # Module init is alpha=1, beta=0; use non-trivial values to exercise them.
    alpha = jax.random.uniform(ka, (1,), minval=0.5, maxval=1.5, dtype=jnp.float32)
    beta = jax.random.uniform(kb, (1,), minval=-0.5, maxval=0.5, dtype=jnp.float32)

    out = decoder_forward(x, encoder_output, alpha, beta)
    out = jax.block_until_ready(out)

    # Plain-JAX reference mirroring the PyTorch module (empty layer stack
    # => output is LayerNorm(x) with Bessel-corrected std and eps on std).
    mean = jnp.mean(x, axis=-1, keepdims=True)
    std = jnp.std(x, axis=-1, keepdims=True, ddof=1)
    ref = alpha.reshape(1, 1, 1) * (x - mean) / (std + 1e-6) + beta.reshape(1, 1, 1)

    assert out.shape == (batch, seq, d_model)
    assert jnp.allclose(out, ref, atol=1e-5, rtol=1e-5)

    print("KERNEL_OK")
</pallas_src>

<mosaic_0001>
module attributes {stable_mosaic.version = 11 : i64} {
  func.func @_layernorm_kernel(%arg0: i32, %arg1: memref<16x32xf32, #tpu.memory_space<vmem>>, %arg2: memref<1x1xf32, #tpu.memory_space<vmem>>, %arg3: memref<1x1xf32, #tpu.memory_space<vmem>>, %arg4: memref<16x32xf32, #tpu.memory_space<vmem>>) attributes {dimension_semantics = [#tpu.dimension_semantics<parallel>], iteration_bounds = array<i64: 1>, scalar_prefetch = 0 : i64, scratch_operands = 0 : i64, tpu.core_type = #tpu.core_type<tc>, window_params = [{transform_indices = @transform_0, window_bounds = array<i64: 16, 32>}, {pipeline_mode = #tpu.pipeline_mode<synchronous>, transform_indices = @transform_1, window_bounds = array<i64: 1, 1>}, {pipeline_mode = #tpu.pipeline_mode<synchronous>, transform_indices = @transform_2, window_bounds = array<i64: 1, 1>}, {transform_indices = @transform_3, window_bounds = array<i64: 16, 32>}]} {
    %c0 = arith.constant 0 : index
    %c0_0 = arith.constant 0 : index
    %0 = vector.load %arg1[%c0, %c0_0] : memref<16x32xf32, #tpu.memory_space<vmem>>, vector<16x32xf32>
    %cst = arith.constant dense<0.000000e+00> : vector<16xf32>
    %1 = vector.multi_reduction <add>, %0, %cst [1] : vector<16x32xf32> to vector<16xf32>
    %2 = vector.shape_cast %1 : vector<16xf32> to vector<16x1xf32>
    %cst_1 = arith.constant 3.200000e+01 : f32
    %3 = vector.broadcast %cst_1 : f32 to vector<16x1xf32>
    %4 = arith.divf %2, %3 : vector<16x1xf32>
    %5 = vector.broadcast %4 : vector<16x1xf32> to vector<16x32xf32>
    %6 = arith.subf %0, %5 : vector<16x32xf32>
    %7 = arith.mulf %6, %6 : vector<16x32xf32>
    %cst_2 = arith.constant dense<0.000000e+00> : vector<16xf32>
    %8 = vector.multi_reduction <add>, %7, %cst_2 [1] : vector<16x32xf32> to vector<16xf32>
    %9 = vector.shape_cast %8 : vector<16xf32> to vector<16x1xf32>
    %cst_3 = arith.constant 0.0322580636 : f32
    %10 = vector.broadcast %cst_3 : f32 to vector<16x1xf32>
    %11 = arith.mulf %9, %10 : vector<16x1xf32>
    %12 = math.sqrt %11 : vector<16x1xf32>
    %c0_4 = arith.constant 0 : index
    %c0_5 = arith.constant 0 : index
    %13 = vector.load %arg2[%c0_4, %c0_5] : memref<1x1xf32, #tpu.memory_space<vmem>>, vector<1x1xf32>
    %14 = vector.broadcast %13 : vector<1x1xf32> to vector<16x32xf32>
    %15 = arith.mulf %14, %6 : vector<16x32xf32>
    %cst_6 = arith.constant 9.99999997E-7 : f32
    %16 = vector.broadcast %cst_6 : f32 to vector<16x1xf32>
    %17 = arith.addf %12, %16 : vector<16x1xf32>
    %18 = vector.broadcast %17 : vector<16x1xf32> to vector<16x32xf32>
    %19 = arith.divf %15, %18 : vector<16x32xf32>
    %c0_7 = arith.constant 0 : index
    %c0_8 = arith.constant 0 : index
    %20 = vector.load %arg3[%c0_7, %c0_8] : memref<1x1xf32, #tpu.memory_space<vmem>>, vector<1x1xf32>
    %21 = vector.broadcast %20 : vector<1x1xf32> to vector<16x32xf32>
    %22 = arith.addf %19, %21 : vector<16x32xf32>
    %c0_9 = arith.constant 0 : index
    %c0_10 = arith.constant 0 : index
    %23 = vector.load %arg4[%c0_9, %c0_10] : memref<16x32xf32, #tpu.memory_space<vmem>>, vector<16x32xf32>
    tpu.vector_store %arg4[%c0_9, %c0_10], %22 {strides = array<i32>} : memref<16x32xf32, #tpu.memory_space<vmem>>, vector<16x32xf32>,
    return
  }
  func.func @transform_0(%arg0: i32) -> (i32, i32) {
    %c0_i32 = arith.constant 0 : i32
    %c0_i32_0 = arith.constant 0 : i32
    return %arg0, %c0_i32 : i32, i32
  }
  func.func @transform_1(%arg0: i32) -> (i32, i32) {
    %c0_i32 = arith.constant 0 : i32
    %c0_i32_0 = arith.constant 0 : i32
    %c0_i32_1 = arith.constant 0 : i32
    return %c0_i32, %c0_i32_0 : i32, i32
  }
  func.func @transform_2(%arg0: i32) -> (i32, i32) {
    %c0_i32 = arith.constant 0 : i32
    %c0_i32_0 = arith.constant 0 : i32
    %c0_i32_1 = arith.constant 0 : i32
    return %c0_i32, %c0_i32_0 : i32, i32
  }
  func.func @transform_3(%arg0: i32) -> (i32, i32) {
    %c0_i32 = arith.constant 0 : i32
    %c0_i32_0 = arith.constant 0 : i32
    return %arg0, %c0_i32 : i32, i32
  }
}

</mosaic_0001>

<bundles_post_ra>
// kernel: tpu_custom_call.1
= control target key start
LH: loop header
LB: loop body
LE: loop exit
PB: predicated region body
PF: predicated region fallthrough
CT: control target
= control target key end

     0   :  { %s230_s0 = inlined_call_operand.hbm [shape: f32[16,32], index: 0, kind: input, shape index: {}]   ;;  %s231_s1 = inlined_call_operand.<no memory space> [shape: f32[1,1], index: 1, kind: input, shape index: {}]   ;;  %s232_s3 = inlined_call_operand.hbm [shape: f32[16,32], index: 3, kind: output, shape index: {}]   ;;  %s233_s2 = inlined_call_operand.<no memory space> [shape: f32[1,1], index: 2, kind: input, shape index: {}]  }
   0x1   :  { %v8_v0 = vstv %s231_s1  ;;  %v10_v1 = vstv %s233_s2 }
   0x2   :  { %9 = vst [vmem:[#allocation2] sm:$0x1] %v8_v0  ;;  %11 = vst [vmem:[#allocation3] sm:$0x1] %v10_v1 }
   0x3   :  { %12 = vsyncpa [#allocation5], 0 }
   0x4   :  { %13 = vsyncpa [#allocation6], 0  ;;  %s181_s16 = smov [#allocation4]  }
   0x5   :  { %s19_s17 = sshll.u32 %s181_s16, 4  ;;  %s20_s17 = int_to_ptr.vmem [resolvable:$true] %s19_s17 }
   0x6   :  { %s145_s18 = scalar_lea.vmem %s20_s17, 256  ;;  %p150_p1 = scmp.lt.s32.totalorder %s20_s17, %s20_s17 }
   0x7   :  { %p146_p0 = scmp.ne.s32.totalorder %s20_s17, %s145_s18  ;;  %p151_p2 = scmp.lt.s32.totalorder %s145_s18, %s145_s18 }
   0x9   :  { %p152_p3 = por %p151_p2, %p150_p1 }
   0xb   :  { %p153_p4 = pnand %p152_p3, %p146_p0 }
   0xd   :  { %156 = shalt.err (!%p153_p4)
}
   0xe   :  { %s182_s19 = smov 128   ;;  %s183_s1 = smov 8  }
   0xf   :  { %25 = dma.hbm_to_vmem [thread:$0]  %s230_s0, 256, %s20_s17, [#allocation5], %s182_s19, %s182_s19, %s183_s1  }
  0x10   :  { %177 = dma.done.wait [#allocation5], 256  }
  0x11   :  { %178 = vsyncadd [#allocation5], 4294967040  ;;  %v184_v2 = vmov 0   ;;  %vm35_vm0 = vcmask 261120   ;;  %v33_v3 = vld [vmem:[#allocation4] sm:$0xff]  ;;  %v34_v4 = vld [vmem:[#allocation4 + $0x8] sm:$0xff] }
  0x12   :  { %127 = vset.pattern.permute.xlu0 %v184_v2  ;;  %128 = vset.pattern.permute.xlu1 %v184_v2  ;;  %v36_v5 = vsel %vm35_vm0, %v33_v3, 0.0  ;;  %v39_v6 = vsel %vm35_vm0, %v34_v4, 0.0  ;;  %v120_v7 = vld [vmem:[#allocation2] ss:$0 sm:$0xff]  ;;  %v121_v18 = vld [vmem:[#allocation3] ss:$0 sm:$0xff] }
  0x13   :  { %37 = vadd.xlane.f32.xlu0 %v36_v5  ;;  %s185_s0 = smov [#allocation7]  }
  0x14   :  { %s108_s21 = sshll.u32 %s185_s0, 4  ;;  %s109_s21 = int_to_ptr.vmem [resolvable:$true] %s108_s21 }
  0x15   :  { %s157_s22 = scalar_lea.vmem %s109_s21, 256  ;;  %p162_p6 = scmp.lt.s32.totalorder %s109_s21, %s109_s21 }
  0x16   :  { %p158_p5 = scmp.ne.s32.totalorder %s109_s21, %s157_s22  ;;  %p163_p7 = scmp.lt.s32.totalorder %s157_s22, %s157_s22 }
  0x17   :  { %40 = vadd.xlane.f32.xlu0 %v39_v6 }
  0x18   :  { %p164_p8 = por %p163_p7, %p162_p6 }
  0x1a   :  { %p165_p9 = pnand %p164_p8, %p158_p5 }
  0x2d   :  { %78 = vperm.xlu0 %127, %v120_v7  }
  0x9c   :  { %v38_v8 = vpop.xlane.xlu0 %37 }
  0x9d   :  { %v43_v9 = vmul.f32 0.03125, %v38_v8 }
  0x9f   :  { %v45_v10 = vsub.f32 %v33_v3, %v43_v9 }
  0xa0   :  { %v41_v11 = vpop.xlane.xlu0 %40 }
  0xa1   :  { %v44_v12 = vmul.f32 0.03125, %v41_v11  ;;  %v47_v13 = vmul.f32 %v45_v10, %v45_v10 }
  0xa3   :  { %v46_v14 = vsub.f32 %v34_v4, %v44_v12  ;;  %v49_v15 = vsel %vm35_vm0, %v47_v13, 0.0 }
  0xa4   :  { %50 = vadd.xlane.f32.xlu1 %v49_v15 }
  0xa5   :  { %v48_v16 = vmul.f32 %v46_v14, %v46_v14 }
  0xa7   :  { %v52_v17 = vsel %vm35_vm0, %v48_v16, 0.0 }
  0xa8   :  { %53 = vadd.xlane.f32.xlu1 %v52_v17  ;;  %v79_v35 = vpop.permute.xlu0 %78 }
  0xa9   :  { %v81_v36 = vmul.f32 %v79_v35, %v45_v10  ;;  %v82_v40 = vmul.f32 %v79_v35, %v46_v14 }
  0xb9   :  { %96 = vperm.xlu1 %128, %v121_v18  }
 0x12d   :  { %v51_v19 = vpop.xlane.xlu1 %50 }
 0x12e   :  { %v55_v20 = vmul.f32 0.032258064, %v51_v19 }
 0x130   :  { %129 = vrsqrt.f32 %v55_v20  ;;  %vm59_vm1 = vcmp.eq.f32.partialorder %v55_v20, inf  ;;  %v62_v25 = vand.u32 2147483648, %v55_v20  ;;  %vm61_vm2 = vcmp.eq.f32.partialorder %v55_v20, 0.0 }
 0x131   :  { %v54_v21 = vpop.xlane.xlu1 %53 }
 0x132   :  { %v56_v22 = vmul.f32 0.032258064, %v54_v21 }
 0x134   :  { %131 = vrsqrt.f32 %v56_v22  ;;  %vm66_vm3 = vcmp.eq.f32.partialorder %v56_v22, inf  ;;  %v69_v31 = vand.u32 2147483648, %v56_v22  ;;  %vm68_vm4 = vcmp.eq.f32.partialorder %v56_v22, 0.0 }
 0x135   :  { %v97_v38 = vpop.permute.xlu1 %96 }
 0x13d   :  { %v130_v23 = vpop.eup %129 }
 0x13e   :  { %v58_v24 = vmul.f32 %v130_v23, %v55_v20 }
 0x140   :  { %v60_v26 = vsel %vm59_vm1, %v55_v20, %v58_v24 }
 0x141   :  { %v132_v27 = vpop.eup %131  ;;  %v63_v28 = vsel %vm61_vm2, %v62_v25, %v60_v26 }
 0x142   :  { %v65_v29 = vmul.f32 %v132_v27, %v56_v22  ;;  %v83_v30 = vadd.f32 1e-06, %v63_v28 }
 0x144   :  { %v67_v32 = vsel %vm66_vm3, %v56_v22, %v65_v29  ;;  %133 = vrcp.f32 %v83_v30 }
 0x145   :  { %v70_v33 = vsel %vm68_vm4, %v69_v31, %v67_v32 }
 0x146   :  { %v84_v34 = vadd.f32 1e-06, %v70_v33 }
 0x148   :  { %135 = vrcp.f32 %v84_v34 }
 0x151   :  { %v134_v37 = vpop.eup %133 }
 0x152   :  { %v86_v39 = vmul.f32 %v134_v37, %v81_v36 }
 0x154   :  { %v99_v41 = vadd.f32 %v97_v38, %v86_v39 }
 0x155   :  { %v136_v42 = vpop.eup %135 }
 0x156   :  { %v88_v43 = vmul.f32 %v136_v42, %v82_v40  ;;  %101 = vst.msk [vmem:[#allocation7] sm:$0xff] %vm35_vm0, %v99_v41 }
 0x158   :  { %v100_v44 = vadd.f32 %v97_v38, %v88_v43 }
 0x15a   :  { %102 = vst.msk [vmem:[#allocation7 + $0x8] sm:$0xff] %vm35_vm0, %v100_v44 }
 0x15b   :  { %168 = shalt.err (!%p165_p9)
}
 0x15c   :  { %114 = dma.vmem_to_hbm [thread:$0]  %s109_s21, 256, %s232_s3, [#allocation6], %s182_s19, %s182_s19, %s183_s1  }
 0x15d   :  { %179 = dma.done.wait [#allocation6], 256  }
 0x15e   :  { %180 = vsyncadd [#allocation6], 4294967040 }
 0x15f   :  { %118 = vsyncpa [#allocation5], 1 }
 0x160   :  { %119 = vsyncpa [#allocation6], 1 }

</bundles_post_ra>
